<compile_context>
chip_gen: v7x
topology: tpu7x:2x2x1
jax: 0.10.0
libtpu: 0.0.40
codegen_flags: <defaults>
</compile_context>

<pallas_src>
import math

import jax
import jax.numpy as jnp
from jax.experimental import pallas as pl
from jax.experimental.pallas import tpu as pltpu


def _num_tensorcores():
    """Best-effort TC-per-chip count (v7x has 2, v5e/v6e have 1)."""
    try:
        kind = jax.devices()[0].device_kind.lower()
        if "v7" in kind or "7x" in kind:
            return 2
    except Exception:
        pass
    return 1


def _pick_tb(B, num_tc, tb=None, max_tb=2048):
    """Pick a batch tile: as large as reasonable (amortize per-step overhead),
    grid length a multiple of num_tc (so v7x uses both TensorCores)."""
    if tb is not None:
        TB = min(tb, B)
        assert B % TB == 0, "batch must be a multiple of the requested tile"
        return TB
    if B <= 128 or B % 128 != 0:
        return B                       # single full-batch tile (always legal)
    best = None
    for cand in range(128, min(B, max_tb) + 1, 128):
        if B % cand == 0 and (B // cand) % num_tc == 0:
            best = cand                # keep the largest valid candidate
    if best is None:
        for cand in range(128, min(B, max_tb) + 1, 128):
            if B % cand == 0:
                best = cand
    if best is None:
        best = B
    return best


def _make_deep_kernel(offsets_py, num_fields):
    """Kernel factory; field offsets are baked in as Python constants."""

    def deep_kernel(idx_ref, emb_ref, w1_ref, b1_ref, w2_ref, b2_ref,
                    w3_ref, b3_ref, o_ref):
        # idx_ref: (F, TB)   int32 VMEM  (field-local indices, batch on lanes)
        # emb_ref: (F*E, Vp) f32   VMEM  (block-masked transposed emb table)
        # w1_ref:  (H1, F*E) f32, b1_ref: (H1, 1)   (BN1 folded in)
        # w2_ref:  (H2, H1)  f32, b2_ref: (H2, 1)   (BN2 folded in)
        # w3_ref:  (1, H2)   f32, b3_ref: (1, 1)
        # o_ref:   (1, TB)   f32  (lane-dense output tile)
        TB = idx_ref.shape[1]
        Vp = emb_ref.shape[1]

        # Multi-hot selection matrix via a single OR chain (disjoint per-field
        # vocab slices -> OR == sum), one cast at the end.
        iota_v = jax.lax.broadcasted_iota(jnp.int32, (Vp, TB), 0)
        hot_b = iota_v == (idx_ref[0:1, :] + offsets_py[0])
        for f in range(1, num_fields):          # F is tiny & static -> unrolled
            hot_b = hot_b | (iota_v == (idx_ref[f:f + 1, :] + offsets_py[f]))
        hot = hot_b.astype(jnp.float32)

        # One MXU matmul realizes gather + concat for all fields: (F*E, TB).
        h0 = jnp.dot(emb_ref[...], hot, preferred_element_type=jnp.float32)

        # MLP (BN folded into W/b), batch stays on the lane axis throughout.
        h1 = jnp.maximum(
            jnp.dot(w1_ref[...], h0, preferred_element_type=jnp.float32)
            + b1_ref[...], 0.0)
        h2 = jnp.maximum(
            jnp.dot(w2_ref[...], h1, preferred_element_type=jnp.float32)
            + b2_ref[...], 0.0)
        o_ref[...] = (jnp.dot(w3_ref[...], h2,
                              preferred_element_type=jnp.float32)
                      + b3_ref[...])

    return deep_kernel


def make_deep_forward(emb_weight, lin_params, bn_params, feature_dims, *,
                      eps=1e-5, tb=None):
    """One-time preprocessing + jit-cached eval-mode forward of DeepModel.

    emb_weight: (V, E) f32; lin_params = ((w1,b1),(w2,b2),(w3,b3)) in PyTorch
    (out, in) layout; bn_params = ((g1,beta1,mean1,var1),(g2,beta2,mean2,var2)).
    Returns forward(x_idx: (B, F) int) -> (B, 1) f32.
    """
    (w1, b1), (w2, b2), (w3, b3) = lin_params
    (g1, be1, m1, v1), (g2, be2, m2, v2) = bn_params

    feature_dims = tuple(int(d) for d in feature_dims)
    F = len(feature_dims)
    V, E = emb_weight.shape
    H1, H2 = w1.shape[0], w2.shape[0]
    FE = F * E
    assert w1.shape[1] == FE, "Linear1 input dim must equal F * embedding_dims"

    # offsets = (0, cumsum(feature_dims)[:-1]) -- static Python constants.
    offs_py = []
    acc = 0
    for d in feature_dims:
        offs_py.append(acc)
        acc += d
    offs_py = tuple(offs_py)

    Vp = max(128, ((V + 127) // 128) * 128)     # lane-pad the vocab axis

    # ---- one-time prep (NOT on the per-call critical path) -----------------
    # Block-masked transposed embedding table: rows [f*E, (f+1)*E) carry only
    # field f's vocab slice, so emb_block @ multihot == concat of per-field
    # gathers (the PyTorch view(B, -1)).
    emb_t = emb_weight.T.astype(jnp.float32)    # (E, V)
    emb_block = jnp.zeros((FE, Vp), jnp.float32)
    for f in range(F):
        s, d = offs_py[f], feature_dims[f]
        emb_block = emb_block.at[f * E:(f + 1) * E, s:s + d].set(
            emb_t[:, s:s + d])

    # Fold eval-mode BatchNorm into the preceding Linear.
    s1 = g1 / jnp.sqrt(v1 + eps)
    w1f = (w1 * s1[:, None]).astype(jnp.float32)
    b1f = (s1 * (b1 - m1) + be1).astype(jnp.float32)[:, None]
    s2 = g2 / jnp.sqrt(v2 + eps)
    w2f = (w2 * s2[:, None]).astype(jnp.float32)
    b2f = (s2 * (b2 - m2) + be2).astype(jnp.float32)[:, None]
    w3f = w3.astype(jnp.float32).reshape(1, H2)
    b3f = b3.astype(jnp.float32).reshape(1, 1)

    # Materialize the folded params now so the forward does zero prep work.
    (emb_block, w1f, b1f, w2f, b2f, w3f, b3f) = jax.block_until_ready(
        (emb_block, w1f, b1f, w2f, b2f, w3f, b3f))

    num_tc = _num_tensorcores()
    kernel = _make_deep_kernel(offs_py, F)

    @jax.jit
    def forward(x_idx):
        B = x_idx.shape[0]
        TB = _pick_tb(B, num_tc, tb)
        x_t = x_idx.T.astype(jnp.int32)          # (F, B) lane-dense indices

        out_t = pl.pallas_call(
            kernel,
            out_shape=jax.ShapeDtypeStruct((1, B), jnp.float32),
            grid=(B // TB,),
            in_specs=[
                pl.BlockSpec((F, TB), lambda i: (0, i)),     # index tile
                pl.BlockSpec((FE, Vp), lambda i: (0, 0)),    # emb (resident)
                pl.BlockSpec((H1, FE), lambda i: (0, 0)),
                pl.BlockSpec((H1, 1), lambda i: (0, 0)),
                pl.BlockSpec((H2, H1), lambda i: (0, 0)),
                pl.BlockSpec((H2, 1), lambda i: (0, 0)),
                pl.BlockSpec((1, H2), lambda i: (0, 0)),
                pl.BlockSpec((1, 1), lambda i: (0, 0)),
            ],
            out_specs=pl.BlockSpec((1, TB), lambda i: (0, i)),  # lane-dense
            compiler_params=pltpu.CompilerParams(
                dimension_semantics=("parallel",)),
        )(x_t, emb_block, w1f, b1f, w2f, b2f, w3f, b3f)

        return out_t.T                            # (B, 1)

    return forward


def reference_forward(x, offsets, emb, w1, b1, g1, be1, m1, v1,
                      w2, b2, g2, be2, m2, v2, w3, b3, eps=1e-5):
    """Pure-JAX reference of the PyTorch eval-mode forward."""
    hp = jax.lax.Precision.HIGHEST
    gidx = x + offsets[None, :]
    e = emb[gidx]                                    # (B, F, E)
    h = e.reshape(e.shape[0], -1)                    # (B, F*E)
    z1 = jnp.dot(h, w1.T, precision=hp) + b1
    z1 = g1 * (z1 - m1) / jnp.sqrt(v1 + eps) + be1
    h1 = jnp.maximum(z1, 0.0)
    z2 = jnp.dot(h1, w2.T, precision=hp) + b2
    z2 = g2 * (z2 - m2) / jnp.sqrt(v2 + eps) + be2
    h2 = jnp.maximum(z2, 0.0)
    return jnp.dot(h2, w3.T, precision=hp) + b3      # (B, 1)


if __name__ == "__main__":
    key = jax.random.PRNGKey(0)
    keys = jax.random.split(key, 16)

    # Module hyper-params: MLP input is embedding_dims * 2 -> exactly 2 fields.
    feature_dims = (10, 12)
    F = len(feature_dims)
    V = sum(feature_dims)
    E = 16                      # embedding_dims
    H1, H2 = 64, 32             # hidden_dims
    B = 256                     # batch (tile auto-picked: B on 1-TC, B/2 on v7x)

    # offsets buffer = (0, cumsum(feature_dims)[:-1]) (reference only).
    offsets = jnp.concatenate(
        [jnp.zeros((1,), jnp.int32),
         jnp.cumsum(jnp.array(feature_dims, jnp.int32))[:-1]])

    # nn.Embedding(V, E) with xavier_uniform_.
    bound = math.sqrt(6.0 / (V + E))
    emb_weight = jax.random.uniform(keys[0], (V, E), jnp.float32,
                                    minval=-bound, maxval=bound)

    def kaiming(k, shape):
        fan_in = shape[1]
        return jax.random.normal(k, shape, jnp.float32) * math.sqrt(2.0 / fan_in)

    def bias_init(k, out_dim, fan_in):
        b = 1.0 / math.sqrt(fan_in)
        return jax.random.uniform(k, (out_dim,), jnp.float32, minval=-b, maxval=b)

    w1 = kaiming(keys[1], (H1, F * E)); b1 = bias_init(keys[2], H1, F * E)
    w2 = kaiming(keys[3], (H2, H1));    b2 = bias_init(keys[4], H2, H1)
    w3 = kaiming(keys[5], (1, H2));     b3 = bias_init(keys[6], 1, H2)

    # Non-trivial BatchNorm running stats / affine params (eval mode).
    g1 = jax.random.uniform(keys[7], (H1,), jnp.float32, minval=0.5, maxval=1.5)
    be1 = 0.1 * jax.random.normal(keys[8], (H1,), jnp.float32)
    m1 = 0.1 * jax.random.normal(keys[9], (H1,), jnp.float32)
    v1 = jax.random.uniform(keys[10], (H1,), jnp.float32, minval=0.5, maxval=1.5)
    g2 = jax.random.uniform(keys[11], (H2,), jnp.float32, minval=0.5, maxval=1.5)
    be2 = 0.1 * jax.random.normal(keys[12], (H2,), jnp.float32)
    m2 = 0.1 * jax.random.normal(keys[13], (H2,), jnp.float32)
    v2 = jax.random.uniform(keys[14], (H2,), jnp.float32, minval=0.5, maxval=1.5)

    # Field-local indices: x[:, f] in [0, feature_dims[f]).
    kx = jax.random.split(keys[15], F)
    cols = [jax.random.randint(kx[f], (B, 1), 0, feature_dims[f], jnp.int32)
            for f in range(F)]
    x = jnp.concatenate(cols, axis=1)            # (B, F)

    # One-time prep (BN fold, embedding block, layout) then a cached forward.
    forward = make_deep_forward(
        emb_weight,
        ((w1, b1), (w2, b2), (w3, b3)),
        ((g1, be1, m1, v1), (g2, be2, m2, v2)),
        feature_dims)

    out = jax.block_until_ready(forward(x))

    ref = reference_forward(x, offsets, emb_weight,
                            w1, b1, g1, be1, m1, v1,
                            w2, b2, g2, be2, m2, v2, w3, b3)

    assert out.shape == (B, 1), out.shape
    assert jnp.allclose(out, ref, atol=2e-3, rtol=2e-3), (
        float(jnp.max(jnp.abs(out - ref))))

    print("KERNEL_OK")
</pallas_src>

<mosaic_0001>
module attributes {stable_mosaic.version = 11 : i64} {
  func.func @deep_kernel(%arg0: i32, %arg1: memref<2x256xi32, #tpu.memory_space<vmem>>, %arg2: memref<32x128xf32, #tpu.memory_space<vmem>>, %arg3: memref<64x32xf32, #tpu.memory_space<vmem>>, %arg4: memref<64x1xf32, #tpu.memory_space<vmem>>, %arg5: memref<32x64xf32, #tpu.memory_space<vmem>>, %arg6: memref<32x1xf32, #tpu.memory_space<vmem>>, %arg7: memref<1x32xf32, #tpu.memory_space<vmem>>, %arg8: memref<1x1xf32, #tpu.memory_space<vmem>>, %arg9: memref<1x256xf32, #tpu.memory_space<vmem>>) attributes {dimension_semantics = [#tpu.dimension_semantics<parallel>], iteration_bounds = array<i64: 1>, scalar_prefetch = 0 : i64, scratch_operands = 0 : i64, tpu.core_type = #tpu.core_type<tc>, window_params = [{transform_indices = @transform_0, window_bounds = array<i64: 2, 256>}, {pipeline_mode = #tpu.pipeline_mode<synchronous>, transform_indices = @transform_1, window_bounds = array<i64: 32, 128>}, {pipeline_mode = #tpu.pipeline_mode<synchronous>, transform_indices = @transform_2, window_bounds = array<i64: 64, 32>}, {pipeline_mode = #tpu.pipeline_mode<synchronous>, transform_indices = @transform_3, window_bounds = array<i64: 64, 1>}, {pipeline_mode = #tpu.pipeline_mode<synchronous>, transform_indices = @transform_4, window_bounds = array<i64: 32, 64>}, {pipeline_mode = #tpu.pipeline_mode<synchronous>, transform_indices = @transform_5, window_bounds = array<i64: 32, 1>}, {pipeline_mode = #tpu.pipeline_mode<synchronous>, transform_indices = @transform_6, window_bounds = array<i64: 1, 32>}, {pipeline_mode = #tpu.pipeline_mode<synchronous>, transform_indices = @transform_7, window_bounds = array<i64: 1, 1>}, {transform_indices = @transform_8, window_bounds = array<i64: 1, 256>}]} {
    %0 = tpu.iota {dimensions = array<i32: 0>} : vector<128x256xi32>
    %c0 = arith.constant 0 : index
    %c0_0 = arith.constant 0 : index
    %1 = vector.load %arg1[%c0, %c0_0] : memref<2x256xi32, #tpu.memory_space<vmem>>, vector<1x256xi32>
    %c0_i32 = arith.constant 0 : i32
    %2 = vector.broadcast %c0_i32 : i32 to vector<1x256xi32>
    %3 = arith.addi %1, %2 : vector<1x256xi32>
    %4 = vector.broadcast %3 : vector<1x256xi32> to vector<128x256xi32>
    %5 = arith.cmpi eq, %0, %4 : vector<128x256xi32>
    %c1 = arith.constant 1 : index
    %c0_1 = arith.constant 0 : index
    %6 = vector.load %arg1[%c1, %c0_1] : memref<2x256xi32, #tpu.memory_space<vmem>>, vector<1x256xi32>
    %c10_i32 = arith.constant 10 : i32
    %7 = vector.broadcast %c10_i32 : i32 to vector<1x256xi32>
    %8 = arith.addi %6, %7 : vector<1x256xi32>
    %9 = vector.broadcast %8 : vector<1x256xi32> to vector<128x256xi32>
    %10 = arith.cmpi eq, %0, %9 : vector<128x256xi32>
    %11 = arith.ori %5, %10 : vector<128x256xi1>
    %12 = arith.extui %11 : vector<128x256xi1> to vector<128x256xi32>
    %13 = arith.sitofp %12 : vector<128x256xi32> to vector<128x256xf32>
    %c0_2 = arith.constant 0 : index
    %c0_3 = arith.constant 0 : index
    %14 = vector.load %arg2[%c0_2, %c0_3] : memref<32x128xf32, #tpu.memory_space<vmem>>, vector<32x128xf32>
    %cst = arith.constant dense<0.000000e+00> : vector<32x256xf32>
    %15 = tpu.matmul %14, %13, %cst {dimension_numbers = #tpu.dot_dimension_numbers<[1], [0], [0], [1], [0, 0, 1, 1], [], []>} : vector<32x128xf32>, vector<128x256xf32>, vector<32x256xf32> -> vector<32x256xf32>
    %c0_4 = arith.constant 0 : index
    %c0_5 = arith.constant 0 : index
    %16 = vector.load %arg3[%c0_4, %c0_5] : memref<64x32xf32, #tpu.memory_space<vmem>>, vector<64x32xf32>
    %cst_6 = arith.constant dense<0.000000e+00> : vector<64x256xf32>
    %17 = tpu.matmul %16, %15, %cst_6 {dimension_numbers = #tpu.dot_dimension_numbers<[1], [0], [0], [1], [0, 0, 1, 1], [], []>} : vector<64x32xf32>, vector<32x256xf32>, vector<64x256xf32> -> vector<64x256xf32>
    %c0_7 = arith.constant 0 : index
    %c0_8 = arith.constant 0 : index
    %18 = vector.load %arg4[%c0_7, %c0_8] : memref<64x1xf32, #tpu.memory_space<vmem>>, vector<64x1xf32>
    %19 = vector.broadcast %18 : vector<64x1xf32> to vector<64x256xf32>
    %20 = arith.addf %17, %19 : vector<64x256xf32>
    %cst_9 = arith.constant 0.000000e+00 : f32
    %21 = vector.broadcast %cst_9 : f32 to vector<64x256xf32>
    %22 = arith.maximumf %20, %21 : vector<64x256xf32>
    %c0_10 = arith.constant 0 : index
    %c0_11 = arith.constant 0 : index
    %23 = vector.load %arg5[%c0_10, %c0_11] : memref<32x64xf32, #tpu.memory_space<vmem>>, vector<32x64xf32>
    %cst_12 = arith.constant dense<0.000000e+00> : vector<32x256xf32>
    %24 = tpu.matmul %23, %22, %cst_12 {dimension_numbers = #tpu.dot_dimension_numbers<[1], [0], [0], [1], [0, 0, 1, 1], [], []>} : vector<32x64xf32>, vector<64x256xf32>, vector<32x256xf32> -> vector<32x256xf32>
    %c0_13 = arith.constant 0 : index
    %c0_14 = arith.constant 0 : index
    %25 = vector.load %arg6[%c0_13, %c0_14] : memref<32x1xf32, #tpu.memory_space<vmem>>, vector<32x1xf32>
    %26 = vector.broadcast %25 : vector<32x1xf32> to vector<32x256xf32>
    %27 = arith.addf %24, %26 : vector<32x256xf32>
    %cst_15 = arith.constant 0.000000e+00 : f32
    %28 = vector.broadcast %cst_15 : f32 to vector<32x256xf32>
    %29 = arith.maximumf %27, %28 : vector<32x256xf32>
    %c0_16 = arith.constant 0 : index
    %c0_17 = arith.constant 0 : index
    %30 = vector.load %arg7[%c0_16, %c0_17] : memref<1x32xf32, #tpu.memory_space<vmem>>, vector<1x32xf32>
    %cst_18 = arith.constant dense<0.000000e+00> : vector<1x256xf32>
    %31 = tpu.matmul %30, %29, %cst_18 {dimension_numbers = #tpu.dot_dimension_numbers<[1], [0], [0], [1], [0, 0, 1, 1], [], []>} : vector<1x32xf32>, vector<32x256xf32>, vector<1x256xf32> -> vector<1x256xf32>
    %c0_19 = arith.constant 0 : index
    %c0_20 = arith.constant 0 : index
    %32 = vector.load %arg8[%c0_19, %c0_20] : memref<1x1xf32, #tpu.memory_space<vmem>>, vector<1x1xf32>
    %33 = vector.broadcast %32 : vector<1x1xf32> to vector<1x256xf32>
    %34 = arith.addf %31, %33 : vector<1x256xf32>
    %c0_21 = arith.constant 0 : index
    %c0_22 = arith.constant 0 : index
    %35 = vector.load %arg9[%c0_21, %c0_22] : memref<1x256xf32, #tpu.memory_space<vmem>>, vector<1x256xf32>
    tpu.vector_store %arg9[%c0_21, %c0_22], %34 {strides = array<i32>} : memref<1x256xf32, #tpu.memory_space<vmem>>, vector<1x256xf32>,
    return
  }
  func.func @transform_0(%arg0: i32) -> (i32, i32) {
    %c0_i32 = arith.constant 0 : i32
    %c0_i32_0 = arith.constant 0 : i32
    return %c0_i32, %arg0 : i32, i32
  }
  func.func @transform_1(%arg0: i32) -> (i32, i32) {
    %c0_i32 = arith.constant 0 : i32
    %c0_i32_0 = arith.constant 0 : i32
    %c0_i32_1 = arith.constant 0 : i32
    return %c0_i32, %c0_i32_0 : i32, i32
  }
  func.func @transform_2(%arg0: i32) -> (i32, i32) {
    %c0_i32 = arith.constant 0 : i32
    %c0_i32_0 = arith.constant 0 : i32
    %c0_i32_1 = arith.constant 0 : i32
    return %c0_i32, %c0_i32_0 : i32, i32
  }
  func.func @transform_3(%arg0: i32) -> (i32, i32) {
    %c0_i32 = arith.constant 0 : i32
    %c0_i32_0 = arith.constant 0 : i32
    %c0_i32_1 = arith.constant 0 : i32
    return %c0_i32, %c0_i32_0 : i32, i32
  }
  func.func @transform_4(%arg0: i32) -> (i32, i32) {
    %c0_i32 = arith.constant 0 : i32
    %c0_i32_0 = arith.constant 0 : i32
    %c0_i32_1 = arith.constant 0 : i32
    return %c0_i32, %c0_i32_0 : i32, i32
  }
  func.func @transform_5(%arg0: i32) -> (i32, i32) {
    %c0_i32 = arith.constant 0 : i32
    %c0_i32_0 = arith.constant 0 : i32
    %c0_i32_1 = arith.constant 0 : i32
    return %c0_i32, %c0_i32_0 : i32, i32
  }
  func.func @transform_6(%arg0: i32) -> (i32, i32) {
    %c0_i32 = arith.constant 0 : i32
    %c0_i32_0 = arith.constant 0 : i32
    %c0_i32_1 = arith.constant 0 : i32
    return %c0_i32, %c0_i32_0 : i32, i32
  }
  func.func @transform_7(%arg0: i32) -> (i32, i32) {
    %c0_i32 = arith.constant 0 : i32
    %c0_i32_0 = arith.constant 0 : i32
    %c0_i32_1 = arith.constant 0 : i32
    return %c0_i32, %c0_i32_0 : i32, i32
  }
  func.func @transform_8(%arg0: i32) -> (i32, i32) {
    %c0_i32 = arith.constant 0 : i32
    %c0_i32_0 = arith.constant 0 : i32
    return %c0_i32, %arg0 : i32, i32
  }
}

</mosaic_0001>

<bundles_post_ra>
// kernel: forward.1
= control target key start
LH: loop header
LB: loop body
LE: loop exit
PB: predicated region body
PF: predicated region fallthrough
CT: control target
= control target key end

     0   :  { %s1504_s0 = inlined_call_operand.hbm [shape: s32[2,256], index: 0, kind: input, shape index: {}]   ;;  %s1505_s1 = inlined_call_operand.hbm [shape: f32[32,128], index: 1, kind: input, shape index: {}]   ;;  %s1506_s2 = inlined_call_operand.hbm [shape: f32[64,32], index: 2, kind: input, shape index: {}]   ;;  %s1507_s3 = inlined_call_operand.hbm [shape: f32[64,1], index: 3, kind: input, shape index: {}]   ;;  %s1508_s4 = inlined_call_operand.hbm [shape: f32[32,64], index: 4, kind: input, shape index: {}]   ;;  %s1509_s5 = inlined_call_operand.hbm [shape: f32[32,1], index: 5, kind: input, shape index: {}]   ;;  %s1510_s6 = inlined_call_operand.vmem [shape: f32[1,32], index: 6, kind: input, shape index: {}]   ;;  %s1511_s7 = inlined_call_operand.<no memory space> [shape: f32[1,1], index: 7, kind: input, shape index: {}]   ;;  %s1512_s8 = inlined_call_operand.hbm [shape: f32[1,256], index: 8, kind: output, shape index: {}]  }
   0x1   :  { %v13_v0 = vstv %s1511_s7 }
   0x2   :  { %14 = vst [vmem:[#allocation2] sm:$0x1] %v13_v0 }
   0x3   :  { %15 = vsyncpa [#allocation4], 0 }
   0x4   :  { %16 = vsyncpa [#allocation7], 0 }
   0x5   :  { %17 = vsyncpa [#allocation10], 0 }
   0x6   :  { %18 = vsyncpa [#allocation13], 0 }
   0x7   :  { %19 = vsyncpa [#allocation5], 0  ;;  %s1196_s29 = smov [#allocation6]   ;;  %s1032_s11 = scalar_lea.hbm %s1505_s1, 512 }
   0x8   :  { %s35_s30 = sshll.u32 %s1196_s29, 4  ;;  %p1033_p0 = scmp.ne.s32.totalorder %s1505_s1, %s1032_s11  ;;  %s36_s30 = int_to_ptr.vmem [resolvable:$true] %s35_s30 }
   0x9   :  { %p1036_p1 = scmp.lt.u32.totalorder %s1032_s11, %s1505_s1 }
   0xb   :  { %p1038_p2 = pnand %p1036_p1, %p1033_p0 }
   0xd   :  { %1041 = shalt.err (!%p1038_p2)
}
   0xe   :  { %s1042_s7 = scalar_lea.vmem %s36_s30, 512  ;;  %p1047_p4 = scmp.lt.s32.totalorder %s36_s30, %s36_s30 }
   0xf   :  { %p1043_p3 = scmp.ne.s32.totalorder %s36_s30, %s1042_s7  ;;  %p1048_p5 = scmp.lt.s32.totalorder %s1042_s7, %s1042_s7 }
  0x11   :  { %p1049_p6 = por %p1048_p5, %p1047_p4 }
  0x13   :  { %p1050_p7 = pnand %p1049_p6, %p1043_p3 }
  0x15   :  { %1053 = shalt.err (!%p1050_p7)
}
  0x16   :  { %s1197_s16 = smov 128   ;;  %s1198_s17 = smov 8  }
  0x17   :  { %41 = dma.hbm_to_vmem [thread:$0]  %s1505_s1, 512, %s36_s30, [#allocation7], %s1197_s16, %s1197_s16, %s1198_s17  }
  0x18   :  { %s1199_s20 = smov [#allocation9]   ;;  %s1200_s22 = smov [#allocation3]  }
  0x19   :  { %s59_s21 = sshll.u32 %s1199_s20, 4  ;;  %s26_s23 = sshll.u32 %s1200_s22, 4  ;;  %s60_s21 = int_to_ptr.vmem [resolvable:$true] %s59_s21  ;;  %s27_s23 = int_to_ptr.vmem [resolvable:$true] %s26_s23 }
  0x1a   :  { %s1054_s26 = scalar_lea.hbm %s1507_s3, 1024 }
  0x1b   :  { %p1055_p8 = scmp.ne.s32.totalorder %s1507_s3, %s1054_s26  ;;  %p1058_p9 = scmp.lt.u32.totalorder %s1054_s26, %s1507_s3 }
  0x1d   :  { %p1060_p10 = pnand %p1058_p9, %p1055_p8 }
  0x1f   :  { %1063 = shalt.err (!%p1060_p10)
}
  0x20   :  { %s1064_s1 = scalar_lea.vmem %s60_s21, 1024  ;;  %p1069_p12 = scmp.lt.s32.totalorder %s60_s21, %s60_s21 }
  0x21   :  { %p1065_p11 = scmp.ne.s32.totalorder %s60_s21, %s1064_s1  ;;  %p1070_p13 = scmp.lt.s32.totalorder %s1064_s1, %s1064_s1 }
  0x23   :  { %p1071_p0 = por %p1070_p13, %p1069_p12 }
  0x25   :  { %p1072_p1 = pnand %p1071_p0, %p1065_p11 }
  0x27   :  { %1075 = shalt.err (!%p1072_p1)
}
  0x28   :  { %65 = dma.hbm_to_vmem [thread:$0]  %s1507_s3, 1024, %s60_s21, [#allocation10], %s1197_s16, %s1197_s16, %s1198_s17  }
  0x29   :  { %s1076_s13 = scalar_lea.hbm %s1504_s0, 64 }
  0x2a   :  { %p1077_p2 = scmp.ne.s32.totalorder %s1504_s0, %s1076_s13  ;;  %p1080_p3 = scmp.lt.u32.totalorder %s1076_s13, %s1504_s0 }
  0x2c   :  { %p1082_p4 = pnand %p1080_p3, %p1077_p2 }
  0x2e   :  { %1085 = shalt.err (!%p1082_p4)
}
  0x2f   :  { %s1086_s19 = scalar_lea.vmem %s27_s23, 64  ;;  %p1091_p6 = scmp.lt.s32.totalorder %s27_s23, %s27_s23 }
  0x30   :  { %p1087_p5 = scmp.ne.s32.totalorder %s27_s23, %s1086_s19  ;;  %p1092_p7 = scmp.lt.s32.totalorder %s1086_s19, %s1086_s19 }
  0x32   :  { %p1093_p8 = por %p1092_p7, %p1091_p6 }
  0x34   :  { %p1094_p9 = pnand %p1093_p8, %p1087_p5 }
  0x36   :  { %1097 = shalt.err (!%p1094_p9)
}
  0x37   :  { %29 = dma.hbm_to_vmem [thread:$0]  %s1504_s0, 64, %s27_s23, [#allocation4]  }
  0x38   :  { %s1201_s21 = smov [#allocation8]   ;;  %s1202_s24 = smov [#allocation11]  }
  0x39   :  { %s47_s22 = sshll.u32 %s1201_s21, 4  ;;  %s71_s25 = sshll.u32 %s1202_s24, 4  ;;  %s48_s22 = int_to_ptr.vmem [resolvable:$true] %s47_s22  ;;  %s72_s25 = int_to_ptr.vmem [resolvable:$true] %s71_s25 }
  0x3a   :  { %s1098_s28 = scalar_lea.hbm %s1506_s2, 1024 }
  0x3b   :  { %p1099_p10 = scmp.ne.s32.totalorder %s1506_s2, %s1098_s28  ;;  %p1102_p11 = scmp.lt.u32.totalorder %s1098_s28, %s1506_s2 }
  0x3d   :  { %p1104_p12 = pnand %p1102_p11, %p1099_p10 }
  0x3f   :  { %1107 = shalt.err (!%p1104_p12)
}
  0x40   :  { %s1108_s0 = scalar_lea.vmem %s48_s22, 1024  ;;  %p1113_p0 = scmp.lt.s32.totalorder %s48_s22, %s48_s22 }
  0x41   :  { %p1109_p13 = scmp.ne.s32.totalorder %s48_s22, %s1108_s0  ;;  %p1114_p1 = scmp.lt.s32.totalorder %s1108_s0, %s1108_s0 }
  0x43   :  { %p1115_p2 = por %p1114_p1, %p1113_p0 }
  0x45   :  { %p1116_p3 = pnand %p1115_p2, %p1109_p13 }
  0x47   :  { %1119 = shalt.err (!%p1116_p3)
}
  0x48   :  { %53 = dma.hbm_to_vmem [thread:$0]  %s1506_s2, 1024, %s48_s22, [#allocation7], %s1197_s16, %s1197_s16, %s1198_s17  }
  0x49   :  { %s1120_s13 = scalar_lea.hbm %s1508_s4, 512 }
  0x4a   :  { %p1121_p4 = scmp.ne.s32.totalorder %s1508_s4, %s1120_s13  ;;  %p1124_p5 = scmp.lt.u32.totalorder %s1120_s13, %s1508_s4 }
  0x4c   :  { %p1126_p6 = pnand %p1124_p5, %p1121_p4 }
  0x4e   :  { %1129 = shalt.err (!%p1126_p6)
}
  0x4f   :  { %s1130_s19 = scalar_lea.vmem %s72_s25, 512  ;;  %p1135_p8 = scmp.lt.s32.totalorder %s72_s25, %s72_s25 }
  0x50   :  { %p1131_p7 = scmp.ne.s32.totalorder %s72_s25, %s1130_s19  ;;  %p1136_p9 = scmp.lt.s32.totalorder %s1130_s19, %s1130_s19 }
  0x52   :  { %p1137_p10 = por %p1136_p9, %p1135_p8 }
  0x54   :  { %p1138_p11 = pnand %p1137_p10, %p1131_p7 }
  0x56   :  { %1141 = shalt.err (!%p1138_p11)
}
  0x57   :  { %77 = dma.hbm_to_vmem [thread:$0]  %s1508_s4, 512, %s72_s25, [#allocation10], %s1197_s16, %s1197_s16, %s1198_s17  }
  0x58   :  { %s1203_s20 = smov [#allocation12]   ;;  %s1142_s26 = scalar_lea.hbm %s1509_s5, 512 }
  0x59   :  { %s83_s21 = sshll.u32 %s1203_s20, 4  ;;  %p1143_p12 = scmp.ne.s32.totalorder %s1509_s5, %s1142_s26  ;;  %s84_s21 = int_to_ptr.vmem [resolvable:$true] %s83_s21 }
  0x5a   :  { %p1146_p13 = scmp.lt.u32.totalorder %s1142_s26, %s1509_s5 }
  0x5c   :  { %p1148_p0 = pnand %p1146_p13, %p1143_p12 }
  0x5e   :  { %1151 = shalt.err (!%p1148_p0)
}
  0x5f   :  { %s1152_s1 = scalar_lea.vmem %s84_s21, 512  ;;  %p1157_p2 = scmp.lt.s32.totalorder %s84_s21, %s84_s21 }
  0x60   :  { %p1153_p1 = scmp.ne.s32.totalorder %s84_s21, %s1152_s1  ;;  %p1158_p3 = scmp.lt.s32.totalorder %s1152_s1, %s1152_s1 }
  0x62   :  { %p1159_p4 = por %p1158_p3, %p1157_p2 }
  0x64   :  { %p1160_p5 = pnand %p1159_p4, %p1153_p1 }
  0x66   :  { %1163 = shalt.err (!%p1160_p5)
}
  0x67   :  { %89 = dma.hbm_to_vmem [thread:$0]  %s1509_s5, 512, %s84_s21, [#allocation13], %s1197_s16, %s1197_s16, %s1198_s17  }
  0x68   :  { %1186 = dma.done.wait [#allocation4], 64  }
  0x69   :  { %1187 = vsyncadd [#allocation4], 4294967232 }
  0x6a   :  { %1188 = dma.done.wait [#allocation7], 1536  }
  0x6b   :  { %1189 = vsyncadd [#allocation7], 4294965760 }
  0x6c   :  { %1190 = dma.done.wait [#allocation10], 1536  }
  0x6d   :  { %1191 = vsyncadd [#allocation10], 4294965760 }
  0x6e   :  { %1192 = dma.done.wait [#allocation13], 512  }
  0x6f   :  { %1193 = vsyncadd [#allocation13], 4294966784  ;;  %v112_v1 = vlaneseq  ;;  %v1204_v2 = vmov 0.0   ;;  %v129_v7 = vld [vmem:[#allocation3] ss:$2 sm:$0x3] }
  0x70   :  { %377 = vmatprep.mubr.f32.mxu0 %v1204_v2  ;;  %547 = vmatprep.mubr.f32.mxu1 %v1204_v2  ;;  %v171_v8 = vld [vmem:[#allocation3 + $0x1] ss:$2 sm:$0x3]  ;;  %v1205_v16 = vmov 1.0|1.0   ;;  %v309_v29 = vld [vmem:[#allocation6] sm:$0xff] }
  0x71   :  { %v1347_v3 = vshrl.u32 %v112_v1, 7  ;;  %v172_v10 = vadd.s32 10, %v171_v8  ;;  %v310_v30 = vld [vmem:[#allocation6 + $0x8] sm:$0xff]  ;;  %v311_v31 = vld [vmem:[#allocation6 + $0x10] sm:$0xff]  ;;  %v312_v32 = vld [vmem:[#allocation6 + $0x18] sm:$0xff]  ;;  %v1206_v34 = vmov 0  }
  0x72   :  { %v410_v33 = vld [vmem:[#allocation9] sm:$0xff]  ;;  %1030 = vset.pattern.permute.xlu0 %v1206_v34  ;;  %1031 = vset.pattern.permute.xlu1 %v1206_v34  ;;  %v412_v35 = vld [vmem:[#allocation9 + $0x10] sm:$0xff]  ;;  %v411_v36 = vld [vmem:[#allocation9 + $0x8] sm:$0xff]  ;;  %s1208_s17 = smov [#allocation14]  }
  0x73   :  { %v136_v4 = vsub.s32 1, %v1347_v3  ;;  %v1351_v5 = vsub.s32 0, %v1347_v3  ;;  %v114_v6 = vadd.s32 8, %v1347_v3  ;;  %v115_v14 = vadd.s32 16, %v1347_v3  ;;  %420 = vperm.xlu0 %1030, %v410_v33   ;;  %430 = vperm.xlu1 %1031, %v412_v35   ;;  %v413_v37 = vld [vmem:[#allocation9 + $0x18] sm:$0xff]  ;;  %v414_v38 = vld [vmem:[#allocation9 + $0x20] sm:$0xff] }
  0x74   :  { %v116_v15 = vadd.s32 24, %v1347_v3  ;;  %v117_v17 = vadd.s32 32, %v1347_v3  ;;  %v118_v18 = vadd.s32 40, %v1347_v3  ;;  %v119_v19 = vadd.s32 48, %v1347_v3  ;;  %v415_v39 = vld [vmem:[#allocation9 + $0x28] sm:$0xff]  ;;  %v416_v40 = vld [vmem:[#allocation9 + $0x30] sm:$0xff] }
  0x75   :  { %v1354_v9 = vrot.slane %v129_v7, %v136_v4  ;;  %v1357_v11 = vrot.slane %v129_v7, %v1351_v5  ;;  %v1361_v12 = vrot.slane %v172_v10, %v136_v4  ;;  %v1365_v13 = vrot.slane %v172_v10, %v1351_v5  ;;  %v417_v41 = vld [vmem:[#allocation9 + $0x38] sm:$0xff]  ;;  %v616_v42 = vld [vmem:[#allocation12] sm:$0xff]  ;;  %v617_v43 = vld [vmem:[#allocation12 + $0x8] sm:$0xff]  ;;  %s864_s30 = sshll.u32 %s1208_s17, 4  ;;  %s865_s30 = int_to_ptr.vmem [resolvable:$true] %s864_s30 }
  0x76   :  { %v120_v20 = vadd.s32 56, %v1347_v3  ;;  %v121_v21 = vadd.s32 64, %v1347_v3  ;;  %v122_v22 = vadd.s32 72, %v1347_v3  ;;  %v123_v23 = vadd.s32 80, %v1347_v3  ;;  %v618_v44 = vld [vmem:[#allocation12 + $0x10] sm:$0xff]  ;;  %v619_v45 = vld [vmem:[#allocation12 + $0x18] sm:$0xff]  ;;  %p1169_p7 = scmp.lt.s32.totalorder %s865_s30, %s865_s30 }
  0x77   :  { %vm139_vm0 = vcmp.eq.s32.totalorder %v1347_v3, %v1354_v9  ;;  %vm141_vm1 = vcmp.eq.s32.totalorder %v114_v6, %v1354_v9  ;;  %vm182_vm2 = vcmp.eq.s32.totalorder %v1347_v3, %v1361_v12  ;;  %vm184_vm3 = vcmp.eq.s32.totalorder %v114_v6, %v1361_v12  ;;  %425 = vperm.xlu0 %1030, %v411_v36   ;;  %v751_v46 = vld [vmem:[#allocation2] sm:$0x1]  ;;  %v402_v59 = vld [vmem:[#allocation8] sm:$0xff]  ;;  %v403_v60 = vld [vmem:[#allocation8 + $0x8] sm:$0xff] }
  0x78   :  { %vm214_vm4 = vmor %vm139_vm0, %vm182_vm2  ;;  %vm138_vm5 = vcmp.eq.s32.totalorder %v1347_v3, %v1357_v11  ;;  %vm181_vm6 = vcmp.eq.s32.totalorder %v1347_v3, %v1365_v13  ;;  %vm140_vm8 = vcmp.eq.s32.totalorder %v114_v6, %v1357_v11  ;;  %vm183_vm9 = vcmp.eq.s32.totalorder %v114_v6, %v1365_v13  ;;  %435 = vperm.xlu1 %1031, %v413_v37   ;;  %v404_v61 = vld [vmem:[#allocation8 + $0x10] sm:$0xff]  ;;  %v405_v62 = vld [vmem:[#allocation8 + $0x18] sm:$0xff] }
  0x79   :  { %vm216_vm7 = vmor %vm141_vm1, %vm184_vm3  ;;  %vm143_vm12 = vcmp.eq.s32.totalorder %v115_v14, %v1354_v9  ;;  %vm186_vm13 = vcmp.eq.s32.totalorder %v115_v14, %v1361_v12  ;;  %vm145_vm15 = vcmp.eq.s32.totalorder %v116_v15, %v1354_v9  ;;  %vm188_vm0 = vcmp.eq.s32.totalorder %v116_v15, %v1361_v12  ;;  %v406_v63 = vld [vmem:[#allocation8 + $0x20] sm:$0xff]  ;;  %v407_v0 = vld [vmem:[#allocation8 + $0x28] sm:$0xff] }
  0x7a   :  { %vm953_vm10 = vmpackc.low %vm216_vm7, %vm214_vm4  ;;  %vm142_vm3 = vcmp.eq.s32.totalorder %v115_v14, %v1357_v11  ;;  %vm185_vm4 = vcmp.eq.s32.totalorder %v115_v14, %v1365_v13  ;;  %vm187_vm7 = vcmp.eq.s32.totalorder %v116_v15, %v1365_v13  ;;  %v124_v24 = vadd.s32 88, %v1347_v3  ;;  %v408_v4 = vld [vmem:[#allocation8 + $0x30] sm:$0xff]  ;;  %v409_v6 = vld [vmem:[#allocation8 + $0x38] sm:$0xff] }
  0x7b   :  { %954 = vmatprep.subr.msk.bf16.mxu0 %vm953_vm10, %v1205_v16  ;;  %vm213_vm11 = vmor %vm138_vm5, %vm181_vm6  ;;  %vm144_vm6 = vcmp.eq.s32.totalorder %v116_v15, %v1357_v11  ;;  %vm147_vm10 = vcmp.eq.s32.totalorder %v117_v17, %v1354_v9  ;;  %v125_v25 = vadd.s32 96, %v1347_v3  ;;  %v126_v26 = vadd.s32 104, %v1347_v3  ;;  %440 = vperm.xlu0 %1030, %v414_v38  }
  0x7c   :  { %vm215_vm14 = vmor %vm140_vm8, %vm183_vm9  ;;  %v127_v27 = vadd.s32 112, %v1347_v3  ;;  %v128_v28 = vadd.s32 120, %v1347_v3  ;;  %445 = vperm.xlu1 %1031, %v415_v39  }
  0x7d   :  { %vm955_vm2 = vmpackc.low %vm215_vm14, %vm213_vm11  ;;  %vm190_vm11 = vcmp.eq.s32.totalorder %v117_v17, %v1361_v12  ;;  %vm192_vm14 = vcmp.eq.s32.totalorder %v118_v18, %v1361_v12 }
  0x7e   :  { %956 = vmatpush1.bf16.msk.msra.mxu0 %vm955_vm2, %v1205_v16  ;;  %vm218_vm1 = vmor %vm143_vm12, %vm186_vm13  ;;  %vm149_vm13 = vcmp.eq.s32.totalorder %v118_v18, %v1354_v9 }
  0x7f   :  { %vm220_vm5 = vmor %vm145_vm15, %vm188_vm0  ;;  %vm146_vm0 = vcmp.eq.s32.totalorder %v117_v17, %v1357_v11  ;;  %450 = vperm.xlu0 %1030, %v416_v40  }
  0x80   :  { %vm957_vm8 = vmpackc.low %vm220_vm5, %vm218_vm1  ;;  %vm189_vm1 = vcmp.eq.s32.totalorder %v117_v17, %v1365_v13  ;;  %vm191_vm5 = vcmp.eq.s32.totalorder %v118_v18, %v1365_v13  ;;  %455 = vperm.xlu1 %1031, %v417_v41  }
  0x81   :  { %958 = vmatprep.subr.msk.bf16.mxu0 %vm957_vm8, %v1205_v16  ;;  %vm217_vm9 = vmor %vm142_vm3, %vm185_vm4  ;;  %vm148_vm4 = vcmp.eq.s32.totalorder %v118_v18, %v1357_v11  ;;  %vm151_vm8 = vcmp.eq.s32.totalorder %v119_v19, %v1354_v9 }
  0x82   :  { %vm219_vm12 = vmor %vm144_vm6, %vm187_vm7 }
  0x83   :  { %vm959_vm2 = vmpackc.low %vm219_vm12, %vm217_vm9  ;;  %vm194_vm9 = vcmp.eq.s32.totalorder %v119_v19, %v1361_v12  ;;  %vm196_vm12 = vcmp.eq.s32.totalorder %v120_v20, %v1361_v12  ;;  %622 = vperm.xlu0 %1030, %v616_v42  }
  0x84   :  { %960 = vmatpush1.bf16.msk.msra.mxu0 %vm959_vm2, %v1205_v16  ;;  %vm222_vm15 = vmor %vm147_vm10, %vm190_vm11  ;;  %vm153_vm11 = vcmp.eq.s32.totalorder %v120_v20, %v1354_v9  ;;  %627 = vperm.xlu1 %1031, %v617_v43  }
  0x85   :  { %vm224_vm3 = vmor %vm149_vm13, %vm192_vm14  ;;  %vm150_vm14 = vcmp.eq.s32.totalorder %v119_v19, %v1357_v11 }
  0x86   :  { %vm961_vm6 = vmpackc.low %vm224_vm3, %vm222_vm15  ;;  %vm193_vm15 = vcmp.eq.s32.totalorder %v119_v19, %v1365_v13  ;;  %vm195_vm3 = vcmp.eq.s32.totalorder %v120_v20, %v1365_v13 }
  0x87   :  { %962 = vmatprep.subr.msk.bf16.mxu0 %vm961_vm6, %v1205_v16  ;;  %vm221_vm7 = vmor %vm146_vm0, %vm189_vm1  ;;  %vm152_vm1 = vcmp.eq.s32.totalorder %v120_v20, %v1357_v11  ;;  %vm155_vm6 = vcmp.eq.s32.totalorder %v121_v21, %v1354_v9  ;;  %632 = vperm.xlu0 %1030, %v618_v44  }
  0x88   :  { %vm223_vm10 = vmor %vm148_vm4, %vm191_vm5  ;;  %637 = vperm.xlu1 %1031, %v619_v45  }
  0x89   :  { %vm963_vm2 = vmpackc.low %vm223_vm10, %vm221_vm7  ;;  %vm198_vm7 = vcmp.eq.s32.totalorder %v121_v21, %v1361_v12  ;;  %vm200_vm10 = vcmp.eq.s32.totalorder %v122_v22, %v1361_v12 }
  0x8a   :  { %964 = vmatpush1.bf16.msk.msra.mxu0 %vm963_vm2, %v1205_v16  ;;  %vm226_vm13 = vmor %vm151_vm8, %vm194_vm9  ;;  %vm157_vm9 = vcmp.eq.s32.totalorder %v122_v22, %v1354_v9 }
  0x8b   :  { %vm228_vm0 = vmor %vm153_vm11, %vm196_vm12  ;;  %vm154_vm12 = vcmp.eq.s32.totalorder %v121_v21, %v1357_v11  ;;  %754 = vperm.xlu0 %1030, %v751_v46  }
  0x8c   :  { %vm965_vm4 = vmpackc.low %vm228_vm0, %vm226_vm13  ;;  %vm197_vm13 = vcmp.eq.s32.totalorder %v121_v21, %v1365_v13  ;;  %vm199_vm0 = vcmp.eq.s32.totalorder %v122_v22, %v1365_v13 }
  0x8d   :  { %966 = vmatprep.subr.msk.bf16.mxu0 %vm965_vm4, %v1205_v16  ;;  %vm225_vm5 = vmor %vm150_vm14, %vm193_vm15  ;;  %vm156_vm15 = vcmp.eq.s32.totalorder %v122_v22, %v1357_v11  ;;  %vm159_vm4 = vcmp.eq.s32.totalorder %v123_v23, %v1354_v9 }
  0x8e   :  { %vm227_vm8 = vmor %vm152_vm1, %vm195_vm3 }
  0x8f   :  { %vm967_vm2 = vmpackc.low %vm227_vm8, %vm225_vm5  ;;  %vm202_vm5 = vcmp.eq.s32.totalorder %v123_v23, %v1361_v12  ;;  %vm204_vm8 = vcmp.eq.s32.totalorder %v124_v24, %v1361_v12 }
  0x90   :  { %968 = vmatpush1.bf16.msk.msra.mxu0 %vm967_vm2, %v1205_v16  ;;  %vm230_vm11 = vmor %vm155_vm6, %vm198_vm7  ;;  %vm161_vm7 = vcmp.eq.s32.totalorder %v124_v24, %v1354_v9 }
  0x91   :  { %vm232_vm14 = vmor %vm157_vm9, %vm200_vm10  ;;  %vm158_vm10 = vcmp.eq.s32.totalorder %v123_v23, %v1357_v11 }
  0x92   :  { %vm969_vm1 = vmpackc.low %vm232_vm14, %vm230_vm11  ;;  %vm201_vm11 = vcmp.eq.s32.totalorder %v123_v23, %v1365_v13  ;;  %vm203_vm14 = vcmp.eq.s32.totalorder %v124_v24, %v1365_v13 }
  0x93   :  { %970 = vmatprep.subr.msk.bf16.mxu0 %vm969_vm1, %v1205_v16  ;;  %vm229_vm3 = vmor %vm154_vm12, %vm197_vm13  ;;  %vm160_vm13 = vcmp.eq.s32.totalorder %v124_v24, %v1357_v11  ;;  %vm163_vm1 = vcmp.eq.s32.totalorder %v125_v25, %v1354_v9 }
  0x94   :  { %vm231_vm6 = vmor %vm156_vm15, %vm199_vm0 }
  0x95   :  { %vm971_vm2 = vmpackc.low %vm231_vm6, %vm229_vm3  ;;  %vm206_vm3 = vcmp.eq.s32.totalorder %v125_v25, %v1361_v12  ;;  %vm208_vm6 = vcmp.eq.s32.totalorder %v126_v26, %v1361_v12 }
  0x96   :  { %972 = vmatpush1.bf16.msk.msra.mxu0 %vm971_vm2, %v1205_v16  ;;  %vm234_vm9 = vmor %vm159_vm4, %vm202_vm5  ;;  %vm165_vm5 = vcmp.eq.s32.totalorder %v126_v26, %v1354_v9 }
  0x97   :  { %vm236_vm12 = vmor %vm161_vm7, %vm204_vm8  ;;  %vm162_vm8 = vcmp.eq.s32.totalorder %v125_v25, %v1357_v11 }
  0x98   :  { %vm973_vm15 = vmpackc.low %vm236_vm12, %vm234_vm9  ;;  %vm205_vm9 = vcmp.eq.s32.totalorder %v125_v25, %v1365_v13  ;;  %vm207_vm12 = vcmp.eq.s32.totalorder %v126_v26, %v1365_v13 }
  0x99   :  { %974 = vmatprep.subr.msk.bf16.mxu0 %vm973_vm15, %v1205_v16  ;;  %vm233_vm0 = vmor %vm158_vm10, %vm201_vm11  ;;  %vm164_vm11 = vcmp.eq.s32.totalorder %v126_v26, %v1357_v11  ;;  %vm167_vm15 = vcmp.eq.s32.totalorder %v127_v27, %v1354_v9 }
  0x9a   :  { %vm235_vm4 = vmor %vm160_vm13, %vm203_vm14 }
  0x9b   :  { %vm975_vm2 = vmpackc.low %vm235_vm4, %vm233_vm0  ;;  %vm210_vm0 = vcmp.eq.s32.totalorder %v127_v27, %v1361_v12  ;;  %vm212_vm4 = vcmp.eq.s32.totalorder %v128_v28, %v1361_v12 }
  0x9c   :  { %976 = vmatpush1.bf16.msk.msra.mxu0 %vm975_vm2, %v1205_v16  ;;  %vm238_vm7 = vmor %vm163_vm1, %vm206_vm3  ;;  %vm169_vm3 = vcmp.eq.s32.totalorder %v128_v28, %v1354_v9 }
  0x9d   :  { %vm240_vm10 = vmor %vm165_vm5, %vm208_vm6  ;;  %vm166_vm6 = vcmp.eq.s32.totalorder %v127_v27, %v1357_v11 }
  0x9e   :  { %vm977_vm13 = vmpackc.low %vm240_vm10, %vm238_vm7  ;;  %vm209_vm7 = vcmp.eq.s32.totalorder %v127_v27, %v1365_v13 }
  0x9f   :  { %978 = vmatprep.subr.msk.bf16.mxu0 %vm977_vm13, %v1205_v16  ;;  %vm237_vm14 = vmor %vm162_vm8, %vm205_vm9  ;;  %vm168_vm8 = vcmp.eq.s32.totalorder %v128_v28, %v1357_v11  ;;  %vm211_vm9 = vcmp.eq.s32.totalorder %v128_v28, %v1365_v13 }
  0xa0   :  { %vm239_vm1 = vmor %vm164_vm11, %vm207_vm12 }
  0xa1   :  { %vm979_vm2 = vmpackc.low %vm239_vm1, %vm237_vm14  ;;  %vm458_vm14 = vcmask 261120  }
  0xa2   :  { %980 = vmatpush1.bf16.msk.msra.mxu0 %vm979_vm2, %v1205_v16  ;;  %vm242_vm5 = vmor %vm167_vm15, %vm210_vm0  ;;  %vm640_vm15 = vcmask 523264   ;;  %vm855_vm0 = vcmp.lt.s32.totalorder %v112_v1, 256 }
  0xa3   :  { %vm244_vm10 = vmor %vm169_vm3, %vm212_vm4 }
  0xa4   :  { %vm981_vm13 = vmpackc.low %vm244_vm10, %vm242_vm5 }
  0xa5   :  { %982 = vmatprep.subr.msk.bf16.mxu0 %vm981_vm13, %v1205_v16  ;;  %vm241_vm11 = vmor %vm166_vm6, %vm209_vm7 }
  0xa6   :  { %vm243_vm12 = vmor %vm168_vm8, %vm211_vm9 }
  0xa7   :  { %vm983_vm1 = vmpackc.low %vm243_vm12, %vm241_vm11 }
  0xa8   :  { %984 = vmatpush1.bf16.msk.msra.mxu0 %vm983_vm1, %v1205_v16 }
  0xab   :  { %378 = vmatmul.mubr.f32.vlgmr.msra.gmra.mrb[0].mxu0 %v309_v29 }
  0xac   :  { %383 = vmatprep.mubr.f32.mxu0 %v1204_v2 }
  0xaf   :  { %384 = vmatmul.mubr.f32.gmra.mrb[2].mxu0 %v310_v30 }
  0xb0   :  { %389 = vmatprep.mubr.f32.mxu0 %v1204_v2 }
  0xb3   :  { %390 = vmatmul.mubr.f32.gmra.mrb[4].mxu0 %v311_v31 }
  0xb4   :  { %395 = vmatprep.mubr.f32.mxu0 %v1204_v2 }
  0xb7   :  { %396 = vmatmul.mubr.f32.gmra.mrb[6].mxu0 %v312_v32 }
  0xb8   :  { %828 = vmatprep.mubr.f32.mxu0 %v1204_v2 }
  0xf2   :  { %v421_v7 = vpop.permute.xlu0 %420  ;;  %v431_v16 = vpop.permute.xlu1 %430 }
  0xf6   :  { %v426_v11 = vpop.permute.xlu0 %425 }
  0xf7   :  { %v436_v27 = vpop.permute.xlu1 %435 }
  0xfa   :  { %v441_v40 = vpop.permute.xlu0 %440 }
  0xfb   :  { %v446_v43 = vpop.permute.xlu1 %445 }
 0x17e   :  { %v379_v47 = vpop.f32.mrb[0].mxu0 }
 0x17f   :  { %v381_v48 = vpop.f32.mrb[1].mxu0 }
 0x182   :  { %v385_v49 = vpop.f32.mrb[2].mxu0 }
 0x183   :  { %v987_v50 = vpack.c.bf16 %v385_v49, %v379_v47  ;;  %v387_v51 = vpop.f32.mrb[3].mxu0 }
 0x184   :  { %v985_v52 = vpack.c.bf16 %v387_v51, %v381_v48 }
 0x186   :  { %v391_v53 = vpop.f32.mrb[4].mxu0  ;;  %986 = vmatprep.subr.bf16.mxu1 %v985_v52 }
 0x187   :  { %v393_v54 = vpop.f32.mrb[5].mxu0  ;;  %988 = vmatpush1.bf16.msra.mxu1 %v987_v50 }
 0x18a   :  { %v397_v55 = vpop.f32.mrb[6].mxu0 }
 0x18b   :  { %v991_v56 = vpack.c.bf16 %v397_v55, %v391_v53  ;;  %v399_v57 = vpop.f32.mrb[7].mxu0 }
 0x18c   :  { %v989_v58 = vpack.c.bf16 %v399_v57, %v393_v54 }
 0x18e   :  { %990 = vmatprep.subr.bf16.mxu1 %v989_v58 }
 0x18f   :  { %992 = vmatpush1.bf16.msra.mxu1 %v991_v56  ;;  %v451_v56 = vpop.permute.xlu0 %450 }
 0x192   :  { %940 = vmatmul.mubr.msk.f32.vlgmr.msra.gmra.mrb[0].mxu1 %vm458_vm14, %v402_v59  ;;  %v456_v59 = vpop.permute.xlu1 %455 }
 0x193   :  { %553 = vmatprep.mubr.f32.mxu1 %v1204_v2 }
 0x196   :  { %941 = vmatmul.mubr.msk.f32.gmra.mrb[2].mxu1 %vm458_vm14, %v403_v60 }
 0x197   :  { %559 = vmatprep.mubr.f32.mxu1 %v1204_v2 }
 0x19a   :  { %942 = vmatmul.mubr.msk.f32.gmra.mrb[4].mxu1 %vm458_vm14, %v404_v61 }
 0x19b   :  { %565 = vmatprep.mubr.f32.mxu1 %v1204_v2 }
 0x19e   :  { %943 = vmatmul.mubr.msk.f32.gmra.mrb[6].mxu1 %vm458_vm14, %v405_v62 }
 0x19f   :  { %571 = vmatprep.mubr.f32.mxu1 %v1204_v2 }
 0x1a2   :  { %944 = vmatmul.mubr.msk.f32.gmra.mrb[8].mxu1 %vm458_vm14, %v406_v63 }
 0x1a3   :  { %577 = vmatprep.mubr.f32.mxu1 %v1204_v2 }
 0x1a6   :  { %945 = vmatmul.mubr.msk.f32.gmra.mrb[10].mxu1 %vm458_vm14, %v407_v0 }
 0x1a7   :  { %583 = vmatprep.mubr.f32.mxu1 %v1204_v2 }
 0x1aa   :  { %946 = vmatmul.mubr.msk.f32.gmra.mrb[12].mxu1 %vm458_vm14, %v408_v4 }
 0x1ab   :  { %589 = vmatprep.mubr.f32.mxu1 %v1204_v2 }
 0x1ae   :  { %947 = vmatmul.mubr.msk.f32.gmra.mrb[14].mxu1 %vm458_vm14, %v409_v6 }
 0x1af   :  { %717 = vmatprep.mubr.f32.mxu1 %v1204_v2 }
 0x265   :  { %v549_v8 = vpop.f32.mrb[0].mxu1 }
 0x266   :  { %v551_v9 = vpop.f32.mrb[1].mxu1  ;;  %v550_v10 = vadd.f32 %v549_v8, %v421_v7 }
 0x267   :  { %v552_v12 = vadd.f32 %v551_v9, %v421_v7 }
 0x268   :  { %v596_v18 = vmax.f32 %v550_v10, 0.0 }
 0x269   :  { %v555_v13 = vpop.f32.mrb[2].mxu1  ;;  %v597_v20 = vmax.f32 %v552_v12, 0.0  ;;  %v613_v12 = vld [vmem:[#allocation11 + $0x8] sm:$0xff] }
 0x26a   :  { %v556_v14 = vadd.f32 %v555_v13, %v426_v11  ;;  %v557_v15 = vpop.f32.mrb[3].mxu1  ;;  %v614_v13 = vld [vmem:[#allocation11 + $0x10] sm:$0xff] }
 0x26b   :  { %v558_v17 = vadd.f32 %v557_v15, %v426_v11  ;;  %v612_v11 = vld [vmem:[#allocation11] sm:$0xff] }
 0x26c   :  { %v598_v19 = vmax.f32 %v556_v14, 0.0  ;;  %v615_v14 = vld [vmem:[#allocation11 + $0x18] sm:$0xff] }
 0x26d   :  { %v599_v21 = vmax.f32 %v558_v17, 0.0  ;;  %v561_v22 = vpop.f32.mrb[4].mxu1  ;;  %v623_v17 = vpop.permute.xlu0 %622 }
 0x26e   :  { %v995_v23 = vpack.c.bf16 %v598_v19, %v596_v18  ;;  %v563_v24 = vpop.f32.mrb[5].mxu1  ;;  %v562_v26 = vadd.f32 %v561_v22, %v431_v16  ;;  %v628_v19 = vpop.permute.xlu1 %627 }
 0x26f   :  { %v993_v25 = vpack.c.bf16 %v599_v21, %v597_v20  ;;  %v564_v28 = vadd.f32 %v563_v24, %v431_v16 }
 0x270   :  { %v600_v33 = vmax.f32 %v562_v26, 0.0 }
 0x271   :  { %v567_v29 = vpop.f32.mrb[6].mxu1  ;;  %994 = vmatprep.subr.bf16.mxu1 %v993_v25  ;;  %v601_v35 = vmax.f32 %v564_v28, 0.0 }
 0x272   :  { %v568_v30 = vadd.f32 %v567_v29, %v436_v27  ;;  %v569_v31 = vpop.f32.mrb[7].mxu1  ;;  %996 = vmatpush1.bf16.msra.mxu1 %v995_v23 }
 0x273   :  { %v570_v32 = vadd.f32 %v569_v31, %v436_v27 }
 0x274   :  { %v602_v34 = vmax.f32 %v568_v30, 0.0 }
 0x275   :  { %v603_v36 = vmax.f32 %v570_v32, 0.0  ;;  %v573_v37 = vpop.f32.mrb[8].mxu1 }
 0x276   :  { %v999_v38 = vpack.c.bf16 %v602_v34, %v600_v33  ;;  %v575_v39 = vpop.f32.mrb[9].mxu1  ;;  %v574_v42 = vadd.f32 %v573_v37, %v441_v40  ;;  %v638_v34 = vpop.permute.xlu1 %637 }
 0x277   :  { %v997_v41 = vpack.c.bf16 %v603_v36, %v601_v35  ;;  %v576_v44 = vadd.f32 %v575_v39, %v441_v40 }
 0x278   :  { %v604_v49 = vmax.f32 %v574_v42, 0.0 }
 0x279   :  { %v579_v45 = vpop.f32.mrb[10].mxu1  ;;  %998 = vmatprep.subr.bf16.mxu1 %v997_v41  ;;  %v605_v51 = vmax.f32 %v576_v44, 0.0 }
 0x27a   :  { %v580_v46 = vadd.f32 %v579_v45, %v446_v43  ;;  %v581_v47 = vpop.f32.mrb[11].mxu1  ;;  %1000 = vmatpush1.bf16.msra.mxu1 %v999_v38 }
 0x27b   :  { %v582_v48 = vadd.f32 %v581_v47, %v446_v43  ;;  %v1207_v47 = vmov 1966171168  }
 0x27c   :  { %v606_v50 = vmax.f32 %v580_v46, 0.0  ;;  %v750_v46 = vld [vmem:[%s1510_s6] sm:$0x1]  ;;  %s1164_s6 = scalar_lea.vmem %s865_s30, 32 }
 0x27d   :  { %v607_v52 = vmax.f32 %v582_v48, 0.0  ;;  %v585_v53 = vpop.f32.mrb[12].mxu1  ;;  %v839_v48 = vunpack.c.l.s4 %v1207_v47  ;;  %p1165_p6 = scmp.ne.s32.totalorder %s865_s30, %s1164_s6  ;;  %p1170_p8 = scmp.lt.s32.totalorder %s1164_s6, %s1164_s6 }
 0x27e   :  { %v1003_v54 = vpack.c.bf16 %v606_v50, %v604_v49  ;;  %v587_v55 = vpop.f32.mrb[13].mxu1  ;;  %v586_v58 = vadd.f32 %v585_v53, %v451_v56 }
 0x27f   :  { %v1001_v57 = vpack.c.bf16 %v607_v52, %v605_v51  ;;  %v588_v60 = vadd.f32 %v587_v55, %v451_v56  ;;  %v840_v50 = vunpack.c.0.s8 %v839_v48  ;;  %p1171_p9 = por %p1170_p8, %p1169_p7 }
 0x280   :  { %v608_v4 = vmax.f32 %v586_v58, 0.0 }
 0x281   :  { %v591_v61 = vpop.f32.mrb[14].mxu1  ;;  %1002 = vmatprep.subr.bf16.mxu1 %v1001_v57  ;;  %v609_v7 = vmax.f32 %v588_v60, 0.0  ;;  %v843_v56 = vsub.s32 %v840_v50, %v1347_v3  ;;  %p1172_p10 = pnand %p1171_p9, %p1165_p6 }
 0x282   :  { %v592_v62 = vadd.f32 %v591_v61, %v456_v59  ;;  %v593_v63 = vpop.f32.mrb[15].mxu1  ;;  %1004 = vmatpush1.bf16.msra.mxu1 %v1003_v54 }
 0x283   :  { %v594_v0 = vadd.f32 %v593_v63, %v456_v59 }
 0x284   :  { %v610_v6 = vmax.f32 %v592_v62, 0.0 }
 0x285   :  { %v611_v8 = vmax.f32 %v594_v0, 0.0 }
 0x286   :  { %v1007_v9 = vpack.c.bf16 %v610_v6, %v608_v4 }
 0x287   :  { %v1005_v10 = vpack.c.bf16 %v611_v8, %v609_v7 }
 0x289   :  { %1006 = vmatprep.subr.bf16.mxu1 %v1005_v10 }
 0x28a   :  { %1008 = vmatpush1.bf16.msra.mxu1 %v1007_v9 }
 0x28d   :  { %948 = vmatmul.mubr.msk.f32.vlgmr.msra.gmra.mrb[16].mxu1 %vm640_vm15, %v612_v11 }
 0x28e   :  { %723 = vmatprep.mubr.f32.mxu1 %v1204_v2 }
 0x291   :  { %949 = vmatmul.mubr.msk.f32.gmra.mrb[18].mxu1 %vm640_vm15, %v613_v12 }
 0x292   :  { %729 = vmatprep.mubr.f32.mxu1 %v1204_v2 }
 0x295   :  { %950 = vmatmul.mubr.msk.f32.gmra.mrb[20].mxu1 %vm640_vm15, %v614_v13 }
 0x296   :  { %735 = vmatprep.mubr.f32.mxu1 %v1204_v2  ;;  %v633_v2 = vpop.permute.xlu0 %632 }
 0x299   :  { %951 = vmatmul.mubr.msk.f32.gmra.mrb[22].mxu1 %vm640_vm15, %v615_v14 }
 0x29a   :  { %v755_v49 = vpop.permute.xlu0 %754 }
 0x29b   :  { %v760_v51 = vrot.slane %v755_v49, %v1351_v5 }
 0x360   :  { %v719_v15 = vpop.f32.mrb[16].mxu1 }
 0x361   :  { %v721_v16 = vpop.f32.mrb[17].mxu1  ;;  %v720_v18 = vadd.f32 %v719_v15, %v623_v17 }
 0x362   :  { %v722_v20 = vadd.f32 %v721_v16, %v623_v17 }
 0x363   :  { %v742_v25 = vmax.f32 %v720_v18, 0.0 }
 0x364   :  { %v725_v21 = vpop.f32.mrb[18].mxu1  ;;  %v743_v27 = vmax.f32 %v722_v20, 0.0 }
 0x365   :  { %v726_v22 = vadd.f32 %v725_v21, %v628_v19  ;;  %v727_v23 = vpop.f32.mrb[19].mxu1 }
 0x366   :  { %v728_v24 = vadd.f32 %v727_v23, %v628_v19 }
 0x367   :  { %v744_v26 = vmax.f32 %v726_v22, 0.0 }
 0x368   :  { %v745_v28 = vmax.f32 %v728_v24, 0.0  ;;  %v731_v29 = vpop.f32.mrb[20].mxu1 }
 0x369   :  { %v1011_v30 = vpack.c.bf16 %v744_v26, %v742_v25  ;;  %v733_v31 = vpop.f32.mrb[21].mxu1  ;;  %v732_v33 = vadd.f32 %v731_v29, %v633_v2 }
 0x36a   :  { %v1009_v32 = vpack.c.bf16 %v745_v28, %v743_v27  ;;  %v734_v35 = vadd.f32 %v733_v31, %v633_v2 }
 0x36b   :  { %v746_v40 = vmax.f32 %v732_v33, 0.0 }
 0x36c   :  { %v737_v36 = vpop.f32.mrb[22].mxu1  ;;  %1010 = vmatprep.subr.bf16.mxu0 %v1009_v32  ;;  %v747_v42 = vmax.f32 %v734_v35, 0.0 }
 0x36d   :  { %v738_v37 = vadd.f32 %v737_v36, %v638_v34  ;;  %v739_v38 = vpop.f32.mrb[23].mxu1  ;;  %1012 = vmatpush1.bf16.msra.mxu0 %v1011_v30 }
 0x36e   :  { %v740_v39 = vadd.f32 %v739_v38, %v638_v34 }
 0x36f   :  { %v748_v41 = vmax.f32 %v738_v37, 0.0 }
 0x370   :  { %v749_v43 = vmax.f32 %v740_v39, 0.0 }
 0x371   :  { %v1015_v44 = vpack.c.bf16 %v748_v41, %v746_v40 }
 0x372   :  { %v1013_v45 = vpack.c.bf16 %v749_v43, %v747_v42 }
 0x374   :  { %1014 = vmatprep.subr.bf16.mxu0 %v1013_v45 }
 0x375   :  { %1016 = vmatpush1.bf16.msra.mxu0 %v1015_v44 }
 0x378   :  { %952 = vmatmul.mubr.msk.f32.vlgmr.msra.gmra.mrb[8].mxu0 %vm458_vm14, %v750_v46 }
 0x44b   :  { %v830_v52 = vpop.f32.mrb[8].mxu0 }
 0x44c   :  { %v831_v53 = vadd.f32 %v830_v52, %v760_v51  ;;  %v832_v54 = vpop.f32.mrb[9].mxu0 }
 0x44d   :  { %v833_v55 = vadd.f32 %v832_v54, %v760_v51 }
 0x44f   :  { %v837_v57 = vcombine.low %v831_v53, %v833_v55 }
 0x451   :  { %v844_v58 = vrot.slane %v837_v57, %v843_v56 }
 0x453   :  { %v851_v59 = vrot.slane %v844_v58, %v843_v56 }
 0x455   :  { %857 = vst.msk [vmem:[#allocation14] sm:$0x3] %vm855_vm0, %v851_v59 }
 0x456   :  { %1175 = shalt.err (!%p1172_p10)
}
 0x457   :  { %s1176_s10 = scalar_lea.hbm %s1512_s8, 32 }
 0x458   :  { %p1177_p11 = scmp.ne.s32.totalorder %s1512_s8, %s1176_s10  ;;  %p1180_p12 = scmp.lt.u32.totalorder %s1176_s10, %s1512_s8 }
 0x45a   :  { %p1182_p13 = pnand %p1180_p12, %p1177_p11 }
 0x45c   :  { %1185 = shalt.err (!%p1182_p13)
}
 0x45d   :  { %867 = dma.vmem_to_hbm [thread:$0]  %s865_s30, 32, %s1512_s8, [#allocation5]  }
 0x45e   :  { %1194 = dma.done.wait [#allocation5], 32  }
 0x45f   :  { %1195 = vsyncadd [#allocation5], 4294967264 }
 0x460   :  { %871 = vsyncpa [#allocation4], 1 }
 0x461   :  { %872 = vsyncpa [#allocation7], 1 }
 0x462   :  { %873 = vsyncpa [#allocation10], 1 }
 0x463   :  { %874 = vsyncpa [#allocation13], 1 }
 0x464   :  { %875 = vsyncpa [#allocation5], 1 }

</bundles_post_ra>
